<compile_context>
chip_gen: v5e
topology: v5e:2x2
jax: 0.10.0
libtpu: 0.0.40
codegen_flags: <defaults>
</compile_context>

<pallas_src>
import functools
import math
from itertools import product

import jax
import jax.numpy as jnp
from jax.experimental import pallas as pl
from jax.experimental.pallas import tpu as pltpu

MAX_TILE_M = 512          # cap keeps double-buffered bf16 tiles small enough for v7x VMEM
_LANE = 128
_BN_EPS = 1e-5
_VMEM_LIMIT = 32 * 1024 * 1024


def _round_up(v, m):
    return ((v + m - 1) // m) * m


# ----------------------------------------------------------------------------
# Pallas kernels
# ----------------------------------------------------------------------------
def _mm_epilogue_kernel(x_ref, w_ref, scale_ref, shift_ref, o_ref, *, act):
    """(TM, K)bf16 @ (K, Np)bf16 -> f32 -> scale/shift -> activation."""
    acc = jnp.dot(x_ref[...], w_ref[...], preferred_element_type=jnp.float32)
    acc = acc * scale_ref[...] + shift_ref[...]
    if act == "relu6":
        acc = jnp.clip(acc, 0.0, 6.0)
    elif act == "sigmoid":
        acc = jax.nn.sigmoid(acc)
    elif act == "tanh":
        acc = jnp.tanh(acc)
    o_ref[...] = acc


def matmul_bn_act(x2d, w, scale, shift, act="none"):
    """Fused (M,K)x(K,N) matmul + per-column scale/shift + activation.

    - MXU operands cast to bf16, accumulation & epilogue stay f32.
    - N padded to a multiple of 128 so output stores are lane-dense (padded
      weight columns are zero and sliced off afterwards).
    - M tiled adaptively (no host-side M padding; uneven boundary blocks are
      handled by Pallas, their garbage rows are never written back).
    """
    M, K = x2d.shape
    Kw, N = w.shape
    assert K == Kw
    Np = _round_up(N, _LANE)
    wb = w.astype(jnp.bfloat16)
    scale1 = jnp.asarray(scale, jnp.float32).reshape(-1)
    shift1 = jnp.asarray(shift, jnp.float32).reshape(-1)
    if Np != N:
        wb = jnp.pad(wb, ((0, 0), (0, Np - N)))
        scale1 = jnp.pad(scale1, (0, Np - N))
        shift1 = jnp.pad(shift1, (0, Np - N))
    xb = x2d if x2d.dtype == jnp.bfloat16 else x2d.astype(jnp.bfloat16)
    bm = min(MAX_TILE_M, _round_up(M, 8))
    grid_m = pl.cdiv(M, bm)
    out = pl.pallas_call(
        functools.partial(_mm_epilogue_kernel, act=act),
        out_shape=jax.ShapeDtypeStruct((M, Np), jnp.float32),
        grid=(grid_m,),
        in_specs=[
            pl.BlockSpec((bm, K), lambda i: (i, 0)),
            pl.BlockSpec((K, Np), lambda i: (0, 0)),
            pl.BlockSpec((1, Np), lambda i: (0, 0)),
            pl.BlockSpec((1, Np), lambda i: (0, 0)),
        ],
        out_specs=pl.BlockSpec((bm, Np), lambda i: (i, 0)),
        compiler_params=pltpu.CompilerParams(
            dimension_semantics=("parallel",),
            vmem_limit_bytes=_VMEM_LIMIT),
    )(xb, wb, scale1.reshape(1, Np), shift1.reshape(1, Np))
    if Np != N:
        out = out[:, :N]
    return out


def _dw3x3_img_kernel(x_ref, w_ref, scale_ref, shift_ref, o_ref, *, act, H, W):
    """Depthwise 3x3 on one padded image: 9 shifted in-kernel reads + BN epilogue."""
    acc = jnp.zeros((H, W, o_ref.shape[-1]), jnp.float32)
    k = 0
    for dy in range(3):
        for dx in range(3):
            acc = acc + x_ref[0, dy:dy + H, dx:dx + W, :] * w_ref[k]
            k += 1
    acc = acc * scale_ref[...] + shift_ref[...]
    if act == "relu6":
        acc = jnp.clip(acc, 0.0, 6.0)
    o_ref[0] = acc


def depthwise3x3_bn_act(x, w33c, scale, shift, act="none"):
    """x: (N,H,W,C), stride 1, zero pad 1, per-channel 3x3 kernel w33c: (3,3,C).

    The 9 shifted reads happen inside the kernel from a (H+2, W+2) halo image
    per grid step -- no 9x host-side replication of the activation.
    TODO(synk): for very large resolutions this should row-tile with halos
    instead of holding a whole padded image per grid step.
    """
    N, H, W, C = x.shape
    xp = jnp.pad(x.astype(jnp.float32), ((0, 0), (1, 1), (1, 1), (0, 0)))
    w9 = w33c.reshape(9, 1, C).astype(jnp.float32)
    scale2 = jnp.asarray(scale, jnp.float32).reshape(1, C)
    shift2 = jnp.asarray(shift, jnp.float32).reshape(1, C)
    return pl.pallas_call(
        functools.partial(_dw3x3_img_kernel, act=act, H=H, W=W),
        out_shape=jax.ShapeDtypeStruct((N, H, W, C), jnp.float32),
        grid=(N,),
        in_specs=[
            pl.BlockSpec((1, H + 2, W + 2, C), lambda i: (i, 0, 0, 0)),
            pl.BlockSpec((9, 1, C), lambda i: (0, 0, 0)),
            pl.BlockSpec((1, C), lambda i: (0, 0)),
            pl.BlockSpec((1, C), lambda i: (0, 0)),
        ],
        out_specs=pl.BlockSpec((1, H, W, C), lambda i: (i, 0, 0, 0)),
        compiler_params=pltpu.CompilerParams(
            dimension_semantics=("parallel",),
            vmem_limit_bytes=_VMEM_LIMIT),
    )(xp, w9, scale2, shift2)


def _smooth_axis1_kernel(x_ref, taps_ref, o_ref, *, K, H):
    """1-D K-tap filter along axis 1 of one (H+K-1, W) map."""
    acc = jnp.zeros(o_ref.shape[1:], jnp.float32)
    for k in range(K):
        acc = acc + taps_ref[k] * x_ref[0, k:k + H, :]
    o_ref[0] = acc


def smooth_along_rows(m, taps):
    """m: (N, H+K-1, W) replicate-padded along axis 1 -> (N, H, W)."""
    N, Hp, W = m.shape
    K = int(taps.shape[0])
    H = Hp - K + 1
    return pl.pallas_call(
        functools.partial(_smooth_axis1_kernel, K=K, H=H),
        out_shape=jax.ShapeDtypeStruct((N, H, W), jnp.float32),
        grid=(N,),
        in_specs=[
            pl.BlockSpec((1, Hp, W), lambda i: (i, 0, 0)),
            pl.BlockSpec((K, 1), lambda i: (0, 0)),
        ],
        out_specs=pl.BlockSpec((1, H, W), lambda i: (i, 0, 0)),
        compiler_params=pltpu.CompilerParams(
            dimension_semantics=("parallel",),
            vmem_limit_bytes=_VMEM_LIMIT),
    )(m.astype(jnp.float32), taps.astype(jnp.float32).reshape(K, 1))


def _logsoftmax_kernel(x_ref, o_ref):
    x = x_ref[...]
    m = jnp.max(x, axis=-1, keepdims=True)
    e = jnp.exp(x - m)
    s = jnp.sum(e, axis=-1, keepdims=True)
    o_ref[...] = x - m - jnp.log(s)


def log_softmax_rows(x2d):
    # TODO(synk): utils.log_softmax is not provided; assumed flatten-per-sample log_softmax.
    R, L = x2d.shape
    rb = 8 if R >= 8 else R
    return pl.pallas_call(
        _logsoftmax_kernel,
        out_shape=jax.ShapeDtypeStruct((R, L), jnp.float32),
        grid=(pl.cdiv(R, rb),),
        in_specs=[pl.BlockSpec((rb, L), lambda i: (i, 0))],
        out_specs=pl.BlockSpec((rb, L), lambda i: (i, 0)),
        compiler_params=pltpu.CompilerParams(
            dimension_semantics=("parallel",),
            vmem_limit_bytes=_VMEM_LIMIT),
    )(x2d.astype(jnp.float32))


# ----------------------------------------------------------------------------
# Conv wrappers (im2col glue in plain JAX, matmul in Pallas)
# ----------------------------------------------------------------------------
def _extract_patches3(x, stride):
    """x: (N,H,W,C) -> (N,Ho,Wo,9*C), pad=1, kernel 3."""
    N, H, W, C = x.shape
    xp = jnp.pad(x, ((0, 0), (1, 1), (1, 1), (0, 0)))
    Ho, Wo = H // stride, W // stride
    cols = []
    for dy in range(3):
        for dx in range(3):
            cols.append(xp[:, dy:dy + stride * Ho:stride, dx:dx + stride * Wo:stride, :])
    return jnp.concatenate(cols, axis=-1)


def conv3x3_bn_act(x, w, scale, shift, act="none", stride=1):
    """w: (3,3,Cin,Cout).

    TODO(synk): patch extraction could be fused into the matmul kernel with a
    halo BlockSpec / manual DMA; here the im2col replication is at least done
    in bf16 (half the bytes) and only for the few full 3x3 convs in the model.
    """
    N, H, W, C = x.shape
    cols = _extract_patches3(x.astype(jnp.bfloat16), stride)
    Ho, Wo = cols.shape[1], cols.shape[2]
    cout = w.shape[-1]
    out = matmul_bn_act(cols.reshape(N * Ho * Wo, 9 * C), w.reshape(9 * C, cout),
                        scale, shift, act)
    return out.reshape(N, Ho, Wo, cout)


def conv1x1_bn_act(x, w, scale, shift, act="none"):
    """w: (Cin, Cout)."""
    N, H, W, C = x.shape
    cout = w.shape[-1]
    out = matmul_bn_act(x.reshape(N * H * W, C), w, scale, shift, act)
    return out.reshape(N, H, W, cout)


def bilinear_x2(x):
    N, H, W, C = x.shape
    return jax.image.resize(x, (N, 2 * H, 2 * W, C), method="linear")


def nearest_resize_int(x, size):
    N, h, w, C = x.shape
    H, W = size
    fy, fx = H // h, W // w
    return jnp.repeat(jnp.repeat(x, fy, axis=1), fx, axis=2)


# ----------------------------------------------------------------------------
# Gaussian prior maps / smoothing taps (parameter-driven, tiny -> JAX glue)
# ----------------------------------------------------------------------------
def make_gaussian_maps(gaussians, size, scaling=6.0):
    """gaussians: (n, 2, 2) with dims [idx, y/x, mu/logstd] -> (n, h, w)."""
    h, w = size
    gy = jnp.linspace(0.0, 1.0, h)
    gx = jnp.linspace(0.0, 1.0, w)
    mu_y = gaussians[:, 0, 0][:, None, None]
    std_y = jnp.exp(gaussians[:, 0, 1])[:, None, None]
    mu_x = gaussians[:, 1, 0][:, None, None]
    std_x = jnp.exp(gaussians[:, 1, 1])[:, None, None]
    my = jnp.exp(-(((gy[None, :, None] - mu_y) / std_y) ** 2) / 2.0)
    mx = jnp.exp(-(((gx[None, None, :] - mu_x) / std_x) ** 2) / 2.0)
    return my * mx * scaling


def manual_gaussians():
    mu = (list(product([0.25, 0.5, 0.75], repeat=2))
          + [(0.5, 0.25), (0.5, 0.5), (0.5, 0.75)]
          + [(0.25, 0.5), (0.5, 0.5), (0.75, 0.5)]
          + [(0.5, 0.5)])
    logstd = [(-1.5, -1.5)] * 9 + [(0.0, -1.5)] * 3 + [(-1.5, 0.0)] * 3 + [(0.0, 0.0)]
    g = jnp.stack([jnp.array(mu, jnp.float32), jnp.array(logstd, jnp.float32)], axis=0)
    return jnp.transpose(g, (1, 2, 0))   # (16, 2, 2): [idx, y/x, mu/logstd]


def smoothing_taps_1d(K):
    """1-D taps of the separable smoothing Gaussian (outer product == original 2-D kernel)."""
    g = jnp.linspace(0.0, 1.0, K)
    g1 = jnp.exp(-(((g - 0.5) / math.exp(-2.0)) ** 2) / 2.0)
    return (g1 / jnp.sum(g1)).astype(jnp.float32)


# ----------------------------------------------------------------------------
# Parameter init helpers
# ----------------------------------------------------------------------------
def _winit(key, shape):
    fan_in = 1
    for d in shape[:-1]:
        fan_in *= d
    return jax.random.normal(key, shape, jnp.float32) / math.sqrt(max(fan_in, 1))


def _bn_identity(c):
    scale = jnp.full((c,), 1.0 / math.sqrt(1.0 + _BN_EPS), jnp.float32)
    shift = jnp.zeros((c,), jnp.float32)
    return scale, shift


# ----------------------------------------------------------------------------
# UNISAL (Pallas)
# ----------------------------------------------------------------------------
class UNISALPallas:
    def __init__(self, key,
                 rnn_input_channels=64, rnn_hidden_channels=64,
                 cnn_channels=(24, 32, 64),          # feat_4x / feat_2x / feat_1x
                 channels_2x=32, channels_4x=16,
                 n_gaussians=16, smoothing_ksize=9,
                 sources=("DHF1K", "Hollywood", "UCFSports", "SALICON"),
                 bypass_rnn=True, res_rnn=True):
        assert not bypass_rnn or res_rnn
        self.sources = sources
        self.bypass_rnn = bypass_rnn
        self.res_rnn = res_rnn
        self.n_gaussians = n_gaussians
        self.smoothing_ksize = smoothing_ksize
        self.rnn_hidden_channels = rnn_hidden_channels
        self.rnn_input_channels = rnn_input_channels

        c4, c2, c1 = cnn_channels
        keys = iter(jax.random.split(key, 64))
        p = {}

        # --- CNN stand-in (3 strided conv stages, BN + ReLU6) ---
        p["cnn"] = {
            "c1_w": _winit(next(keys), (3, 3, 3, c4)),
            "c2_w": _winit(next(keys), (3, 3, c4, c2)),
            "c3_w": _winit(next(keys), (3, 3, c2, c1)),
        }
        for name, c in (("c1", c4), ("c2", c2), ("c3", c1)):
            p["cnn"][name + "_scale"], p["cnn"][name + "_shift"] = _bn_identity(c)

        def skip_params(cin, cout):
            hid = cin * 2
            s1, b1 = _bn_identity(hid)
            s2, b2 = _bn_identity(cout)
            return {"exp_w": _winit(next(keys), (cin, hid)), "exp_scale": s1, "exp_shift": b1,
                    "red_w": _winit(next(keys), (hid, cout)), "red_scale": s2, "red_shift": b2}

        p["skip_2x"] = skip_params(c2, channels_2x)
        p["skip_4x"] = skip_params(c4, channels_4x)

        def inv_res_params(cin, cout, expand_ratio):
            d = {"use_res": (cin == cout)}
            hid = cin * expand_ratio
            if expand_ratio != 1:
                s, b = _bn_identity(hid)
                d["expand"] = {"w": _winit(next(keys), (cin, hid)), "scale": s, "shift": b}
            s, b = _bn_identity(hid)
            d["dw"] = {"w": _winit(next(keys), (3, 3, hid)), "scale": s, "shift": b}
            s, b = _bn_identity(cout)
            d["project"] = {"w": _winit(next(keys), (hid, cout)), "scale": s, "shift": b}
            return d

        p["post_cnn"] = inv_res_params(c1 + n_gaussians, rnn_input_channels, 1)
        p["us2_inv_res"] = inv_res_params(rnn_input_channels + channels_2x, channels_2x, 2)
        p["post_us2_inv_res"] = inv_res_params(channels_2x + channels_4x, channels_4x, 2)

        # --- ConvGRU ---
        ci, ch = rnn_input_channels, rnn_hidden_channels
        p["rnn"] = {
            "w_gates": _winit(next(keys), (3, 3, ci + ch, 2 * ch)),
            "gate_scale": jnp.ones((2 * ch,), jnp.float32),
            "gate_shift": jnp.zeros((2 * ch,), jnp.float32),
            "w_cand": _winit(next(keys), (3, 3, ci + ch, ch)),
            "cand_scale": jnp.ones((ch,), jnp.float32),
            "cand_shift": jnp.zeros((ch,), jnp.float32),
        }
        s, b = _bn_identity(rnn_input_channels)
        p["post_rnn"] = {"w": _winit(next(keys), (ch, rnn_input_channels)),
                         "scale": s, "shift": b}

        # --- per-source heads ---
        gaussians = manual_gaussians()
        taps = smoothing_taps_1d(smoothing_ksize)
        p["gaussians"], p["adaptation"], p["smoothing"] = {}, {}, {}
        for src in sources:
            p["gaussians"][src] = gaussians
            p["adaptation"][src] = {"w": _winit(next(keys), (channels_4x, 1)),
                                    "b": jnp.zeros((1,), jnp.float32)}
            p["smoothing"][src] = taps
        self.p = p

    # ----- submodules (all batched over N = B*T) -----
    def cnn(self, img):
        p = self.p["cnn"]
        f4 = conv3x3_bn_act(img, p["c1_w"], p["c1_scale"], p["c1_shift"], "relu6", stride=2)
        f2 = conv3x3_bn_act(f4, p["c2_w"], p["c2_scale"], p["c2_shift"], "relu6", stride=2)
        f1 = conv3x3_bn_act(f2, p["c3_w"], p["c3_scale"], p["c3_shift"], "relu6", stride=2)
        return f1, f2, f4

    def skip(self, x, p):
        h = conv1x1_bn_act(x, p["exp_w"], p["exp_scale"], p["exp_shift"], "relu6")
        # Dropout2d -> identity (eval mode)
        return conv1x1_bn_act(h, p["red_w"], p["red_scale"], p["red_shift"], "none")

    def inverted_residual(self, x, p):
        h = x
        if "expand" in p:
            e = p["expand"]
            h = conv1x1_bn_act(h, e["w"], e["scale"], e["shift"], "relu6")
        d = p["dw"]
        h = depthwise3x3_bn_act(h, d["w"], d["scale"], d["shift"], "relu6")
        pr = p["project"]
        h = conv1x1_bn_act(h, pr["w"], pr["scale"], pr["shift"], "none")
        if p["use_res"]:
            h = x + h
        return h

    def conv_gru(self, feat_all, B, T, h0):
        """feat_all: (B*T, h, w, ci), index = b*T + t.  x-dependent gate/candidate
        halves are precomputed for the whole clip; only the h-dependent halves
        (K = ch) run sequentially."""
        NT, Hh, Ww, ci = feat_all.shape
        ch = self.rnn_hidden_channels
        p = self.p["rnn"]
        ones2, zeros2 = jnp.ones((2 * ch,), jnp.float32), jnp.zeros((2 * ch,), jnp.float32)
        ones1, zeros1 = jnp.ones((ch,), jnp.float32), jnp.zeros((ch,), jnp.float32)
        w_gates_x, w_gates_h = p["w_gates"][:, :, :ci, :], p["w_gates"][:, :, ci:, :]
        w_cand_x, w_cand_h = p["w_cand"][:, :, :ci, :], p["w_cand"][:, :, ci:, :]

        gx_all = conv3x3_bn_act(feat_all, w_gates_x, ones2, zeros2, "none")
        cx_all = conv3x3_bn_act(feat_all, w_cand_x, ones1, zeros1, "none")
        gx_all = gx_all.reshape(B, T, Hh, Ww, 2 * ch)
        cx_all = cx_all.reshape(B, T, Hh, Ww, ch)

        h = h0 if h0 is not None else jnp.zeros((B, Hh, Ww, ch), jnp.float32)
        seq = []
        for t in range(T):
            gh = conv3x3_bn_act(h, w_gates_h, ones2, zeros2, "none")
            gates = jax.nn.sigmoid((gx_all[:, t] + gh) * p["gate_scale"] + p["gate_shift"])
            z, r = gates[..., :ch], gates[..., ch:]
            chh = conv3x3_bn_act(r * h, w_cand_h, ones1, zeros1, "none")
            n = jnp.tanh((cx_all[:, t] + chh) * p["cand_scale"] + p["cand_shift"])
            h = (1.0 - z) * h + z * n
            seq.append(h)
        rnn_all = jnp.stack(seq, axis=1).reshape(NT, Hh, Ww, ch)
        return rnn_all, h

    def smoothing(self, x, source):
        """Separable replicate-padded Gaussian: two 1-D Pallas VPU passes,
        exactly equivalent to the original 2-D outer-product smoothing conv."""
        K = self.smoothing_ksize
        pad = K // 2
        taps = self.p["smoothing"][source]
        m = x[..., 0]                                              # (N, H, W)
        m = jnp.pad(m, ((0, 0), (pad, pad), (0, 0)), mode="edge")
        m = smooth_along_rows(m, taps)                             # filter along H
        m = jnp.transpose(m, (0, 2, 1))
        m = jnp.pad(m, ((0, 0), (pad, pad), (0, 0)), mode="edge")
        m = smooth_along_rows(m, taps)                             # filter along W
        m = jnp.transpose(m, (0, 2, 1))
        return m[..., None]

    # ----- forward -----
    def forward(self, x, target_size=None, h0=None, return_hidden=False,
                source="DHF1K", static=None):
        B, T, C, H, W = x.shape
        if target_size is None:
            target_size = (H, W)
        if static is None:
            static = (T == 1) or (self.sources == ("SALICON",))
        NT = B * T

        # ---- time-independent encoder, batched over B*T ----
        imgs = jnp.transpose(x.reshape(NT, C, H, W), (0, 2, 3, 1))   # NCHW -> NHWC
        f1, f2, f4 = self.cnn(imgs)
        f2 = self.skip(f2, self.p["skip_2x"])
        f4 = self.skip(f4, self.p["skip_4x"])
        if self.n_gaussians > 0:
            gm = make_gaussian_maps(self.p["gaussians"][source], f1.shape[1:3])
            gm = jnp.broadcast_to(jnp.transpose(gm, (1, 2, 0))[None],
                                  (NT, f1.shape[1], f1.shape[2], self.n_gaussians))
            f1 = jnp.concatenate([f1, gm], axis=-1)
        f1 = self.inverted_residual(f1, self.p["post_cnn"])          # (B*T, h1, w1, ci)

        # ---- RNN (sequential over T only) ----
        hidden = None
        im_feat = f1
        if not (static and self.bypass_rnn):
            rnn_all, hidden = self.conv_gru(f1, B, T, h0)
            pr = self.p["post_rnn"]
            rf = conv1x1_bn_act(rnn_all, pr["w"], pr["scale"], pr["shift"], "relu6")
            im_feat = f1 + rf if self.res_rnn else rf

        # ---- decoder, batched over B*T ----
        im_feat = bilinear_x2(im_feat)
        im_feat = jnp.concatenate([im_feat, f2], axis=-1)
        im_feat = self.inverted_residual(im_feat, self.p["us2_inv_res"])
        im_feat = bilinear_x2(im_feat)
        im_feat = jnp.concatenate([im_feat, f4], axis=-1)
        im_feat = self.inverted_residual(im_feat, self.p["post_us2_inv_res"])
        ap = self.p["adaptation"][source]
        im_feat = conv1x1_bn_act(im_feat, ap["w"], jnp.ones((1,), jnp.float32),
                                 ap["b"], "none")
        im_feat = nearest_resize_int(im_feat, (H, W))
        im_feat = self.smoothing(im_feat, source)
        im_feat = jax.image.resize(im_feat, (NT, target_size[0], target_size[1], 1),
                                   method="linear")
        flat = log_softmax_rows(im_feat.reshape(NT, -1))
        out = flat.reshape(B, T, target_size[0], target_size[1], 1)
        output_seq = jnp.transpose(out, (0, 1, 4, 2, 3))             # (B, T, 1, Ht, Wt)
        if return_hidden:
            return [output_seq, hidden]
        return output_seq


# ----------------------------------------------------------------------------
if __name__ == "__main__":
    key = jax.random.PRNGKey(0)
    pkey, xkey = jax.random.split(key)
    model = UNISALPallas(pkey)
    # small shapes: B=1 video of T=2 RGB frames, 32x32
    x = jax.random.normal(xkey, (1, 2, 3, 32, 32), jnp.float32)
    out = model.forward(x, source="DHF1K")
    out = jax.block_until_ready(out)
    assert out.shape == (1, 2, 1, 32, 32)
    assert bool(jnp.all(jnp.isfinite(out)))
    print("KERNEL_OK")
</pallas_src>

<mosaic_0001>
module attributes {stable_mosaic.version = 11 : i64} {
  func.func @_mm_epilogue_kernel(%arg0: i32, %arg1: memref<512x27xbf16, #tpu.memory_space<vmem>>, %arg2: memref<27x128xbf16, #tpu.memory_space<vmem>>, %arg3: memref<1x128xf32, #tpu.memory_space<vmem>>, %arg4: memref<1x128xf32, #tpu.memory_space<vmem>>, %arg5: memref<512x128xf32, #tpu.memory_space<vmem>>) attributes {dimension_semantics = [#tpu.dimension_semantics<parallel>], iteration_bounds = array<i64: 1>, scalar_prefetch = 0 : i64, scratch_operands = 0 : i64, tpu.core_type = #tpu.core_type<tc>, window_params = [{transform_indices = @transform_0, window_bounds = array<i64: 512, 27>}, {pipeline_mode = #tpu.pipeline_mode<synchronous>, transform_indices = @transform_1, window_bounds = array<i64: 27, 128>}, {pipeline_mode = #tpu.pipeline_mode<synchronous>, transform_indices = @transform_2, window_bounds = array<i64: 1, 128>}, {pipeline_mode = #tpu.pipeline_mode<synchronous>, transform_indices = @transform_3, window_bounds = array<i64: 1, 128>}, {transform_indices = @transform_4, window_bounds = array<i64: 512, 128>}]} {
    %c0 = arith.constant 0 : index
    %c0_0 = arith.constant 0 : index
    %0 = vector.load %arg1[%c0, %c0_0] : memref<512x27xbf16, #tpu.memory_space<vmem>>, vector<512x27xbf16>
    %c0_1 = arith.constant 0 : index
    %c0_2 = arith.constant 0 : index
    %1 = vector.load %arg2[%c0_1, %c0_2] : memref<27x128xbf16, #tpu.memory_space<vmem>>, vector<27x128xbf16>
    %cst = arith.constant dense<0.000000e+00> : vector<512x128xf32>
    %2 = tpu.matmul %0, %1, %cst {dimension_numbers = #tpu.dot_dimension_numbers<[1], [0], [0], [1], [0, 0, 1, 1], [], []>} : vector<512x27xbf16>, vector<27x128xbf16>, vector<512x128xf32> -> vector<512x128xf32>
    %c0_3 = arith.constant 0 : index
    %c0_4 = arith.constant 0 : index
    %3 = vector.load %arg3[%c0_3, %c0_4] : memref<1x128xf32, #tpu.memory_space<vmem>>, vector<1x128xf32>
    %4 = vector.broadcast %3 : vector<1x128xf32> to vector<512x128xf32>
    %5 = arith.mulf %2, %4 : vector<512x128xf32>
    %c0_5 = arith.constant 0 : index
    %c0_6 = arith.constant 0 : index
    %6 = vector.load %arg4[%c0_5, %c0_6] : memref<1x128xf32, #tpu.memory_space<vmem>>, vector<1x128xf32>
    %7 = vector.broadcast %6 : vector<1x128xf32> to vector<512x128xf32>
    %8 = arith.addf %5, %7 : vector<512x128xf32>
    %cst_7 = arith.constant 0.000000e+00 : f32
    %cst_8 = arith.constant 6.000000e+00 : f32
    %9 = vector.broadcast %cst_7 : f32 to vector<512x128xf32>
    %10 = arith.maximumf %9, %8 : vector<512x128xf32>
    %11 = vector.broadcast %cst_8 : f32 to vector<512x128xf32>
    %12 = arith.minimumf %11, %10 : vector<512x128xf32>
    %c0_9 = arith.constant 0 : index
    %c0_10 = arith.constant 0 : index
    %13 = vector.load %arg5[%c0_9, %c0_10] : memref<512x128xf32, #tpu.memory_space<vmem>>, vector<512x128xf32>
    tpu.vector_store %arg5[%c0_9, %c0_10], %12 {strides = array<i32>} : memref<512x128xf32, #tpu.memory_space<vmem>>, vector<512x128xf32>,
    return
  }
  func.func @transform_0(%arg0: i32) -> (i32, i32) {
    %c0_i32 = arith.constant 0 : i32
    %c0_i32_0 = arith.constant 0 : i32
    return %arg0, %c0_i32 : i32, i32
  }
  func.func @transform_1(%arg0: i32) -> (i32, i32) {
    %c0_i32 = arith.constant 0 : i32
    %c0_i32_0 = arith.constant 0 : i32
    %c0_i32_1 = arith.constant 0 : i32
    return %c0_i32, %c0_i32_0 : i32, i32
  }
  func.func @transform_2(%arg0: i32) -> (i32, i32) {
    %c0_i32 = arith.constant 0 : i32
    %c0_i32_0 = arith.constant 0 : i32
    %c0_i32_1 = arith.constant 0 : i32
    return %c0_i32, %c0_i32_0 : i32, i32
  }
  func.func @transform_3(%arg0: i32) -> (i32, i32) {
    %c0_i32 = arith.constant 0 : i32
    %c0_i32_0 = arith.constant 0 : i32
    %c0_i32_1 = arith.constant 0 : i32
    return %c0_i32, %c0_i32_0 : i32, i32
  }
  func.func @transform_4(%arg0: i32) -> (i32, i32) {
    %c0_i32 = arith.constant 0 : i32
    %c0_i32_0 = arith.constant 0 : i32
    return %arg0, %c0_i32 : i32, i32
  }
}

</mosaic_0001>

<bundles_post_ra>
// kernel: tpu_custom_call.1
= control target key start
LH: loop header
LB: loop body
LE: loop exit
PB: predicated region body
PF: predicated region fallthrough
CT: control target
= control target key end

     0   :  { %vm355_vm0 = vcmask 1044480   ;;  %vm356_vm1 = vcmask 1045504   ;;  %v1117_v3 = vmov 65535   ;;  %s1424_s0 = inlined_call_operand.vmem [shape: bf16[512,27], index: 0, kind: input, shape index: {}]   ;;  %s1425_s1 = inlined_call_operand.vmem [shape: bf16[27,128], index: 1, kind: input, shape index: {}]   ;;  %s1426_s2 = inlined_call_operand.vmem [shape: f32[1,128], index: 2, kind: input, shape index: {}]   ;;  %s1427_s3 = inlined_call_operand.vmem [shape: f32[1,128], index: 3, kind: input, shape index: {}]   ;;  %s1428_s4 = inlined_call_operand.hbm [shape: f32[512,128], index: 4, kind: output, shape index: {}]  }
   0x1   :  { %v1011_v0 = vld [vmem:[%s1425_s1 + $0x8] sm:$0xf]  ;;  %v1078_v1 = vld [vmem:[%s1425_s1 + $0x8] sm:$0x30]  ;;  %v357_v4 = vsel %vm355_vm0, 4294967295, %v1117_v3 }
   0x2   :  { %v1012_v2 = vor.u32 %v1078_v1, %v1011_v0  ;;  %v358_v5 = vsel %vm356_vm1, %v357_v4, 0 }
   0x4   :  { %v360_v6 = vand.u32 %v1012_v2, %v358_v5 }
   0x5   :  { %9 = vsyncpa [#allocation3], 0  ;;  %v1077_v7 = vld [vmem:[%s1425_s1] sm:$0xff]  ;;  %vm258_vm2 = vcmask 220160   ;;  %v1046_v12 = vld [vmem:[%s1424_s0 + $0x8] sm:$0xff]  ;;  %s865_s9 = sshll.u32 %s1428_s4, 4  ;;  %s866_s9 = int_to_ptr.hbm [resolvable:$true] %s865_s9 }
   0x6   :  { %368 = vmatpush.bf16.msra.mxu0 %v360_v6  ;;  %1079 = vmatpush.bf16.msra.mxu1 %v360_v6  ;;  %v1045_v8 = vld [vmem:[%s1424_s0] sm:$0xff]  ;;  %v1054_v13 = vld [vmem:[%s1424_s0 + $0x48] sm:$0xff]  ;;  %v1047_v16 = vld [vmem:[%s1424_s0 + $0x10] sm:$0xff]  ;;  %s1119_s10 = smov 128   ;;  %s1120_s11 = smov 8  }
   0x7   :  { %1080 = vmatpush.bf16.msra.mxu2 %v360_v6  ;;  %1081 = vmatpush.bf16.msra.mxu3 %v360_v6  ;;  %v1053_v9 = vld [vmem:[%s1424_s0 + $0x40] sm:$0xff]  ;;  %v1062_v14 = vld [vmem:[%s1424_s0 + $0x88] sm:$0xff]  ;;  %v1055_v17 = vld [vmem:[%s1424_s0 + $0x50] sm:$0xff] }
   0x8   :  { %v1061_v10 = vld [vmem:[%s1424_s0 + $0x80] sm:$0xff]  ;;  %v1070_v15 = vld [vmem:[%s1424_s0 + $0xc8] sm:$0xff]  ;;  %v1063_v18 = vld [vmem:[%s1424_s0 + $0x90] sm:$0xff] }
   0x9   :  { %v1069_v11 = vld [vmem:[%s1424_s0 + $0xc0] sm:$0xff]  ;;  %v1071_v19 = vld [vmem:[%s1424_s0 + $0xd0] sm:$0xff]  ;;  %v1048_v20 = vld [vmem:[%s1424_s0 + $0x18] sm:$0xff] }
   0xa   :  { %369 = vmatpush.bf16.msra.mxu0 %v1077_v7  ;;  %1082 = vmatpush.bf16.msra.mxu1 %v1077_v7  ;;  %v1056_v21 = vld [vmem:[%s1424_s0 + $0x58] sm:$0xff]  ;;  %v1049_v24 = vld [vmem:[%s1424_s0 + $0x20] sm:$0xff]  ;;  %v1050_v28 = vld [vmem:[%s1424_s0 + $0x28] sm:$0xff] }
   0xb   :  { %1083 = vmatpush.bf16.msra.mxu2 %v1077_v7  ;;  %1084 = vmatpush.bf16.msra.mxu3 %v1077_v7  ;;  %v1064_v22 = vld [vmem:[%s1424_s0 + $0x98] sm:$0xff]  ;;  %v1057_v25 = vld [vmem:[%s1424_s0 + $0x60] sm:$0xff]  ;;  %v1058_v29 = vld [vmem:[%s1424_s0 + $0x68] sm:$0xff] }
   0xc   :  { %v1072_v23 = vld [vmem:[%s1424_s0 + $0xd8] sm:$0xff]  ;;  %v1065_v26 = vld [vmem:[%s1424_s0 + $0xa0] sm:$0xff]  ;;  %v1066_v30 = vld [vmem:[%s1424_s0 + $0xa8] sm:$0xff] }
   0xd   :  { %1013 = vmatmul.msk.bf16.vlgmr.msra.gmra.mxu0 %vm258_vm2, %v1045_v8  ;;  %1021 = vmatmul.msk.bf16.vlgmr.msra.gmra.mxu1 %vm258_vm2, %v1053_v9  ;;  %v1073_v27 = vld [vmem:[%s1424_s0 + $0xe0] sm:$0xff]  ;;  %v1074_v31 = vld [vmem:[%s1424_s0 + $0xe8] sm:$0xff]  ;;  %v1051_v32 = vld [vmem:[%s1424_s0 + $0x30] sm:$0xff] }
   0xe   :  { %1029 = vmatmul.msk.bf16.vlgmr.msra.gmra.mxu2 %vm258_vm2, %v1061_v10  ;;  %1037 = vmatmul.msk.bf16.vlgmr.msra.gmra.mxu3 %vm258_vm2, %v1069_v11  ;;  %v1059_v33 = vld [vmem:[%s1424_s0 + $0x70] sm:$0xff]  ;;  %v1052_v36 = vld [vmem:[%s1424_s0 + $0x38] sm:$0xff]  ;;  %v1286_v40 = vld [vmem:[%s1426_s2] ss:$0 sm:$0xff] }
   0xf   :  { %v1067_v34 = vld [vmem:[%s1424_s0 + $0xb0] sm:$0xff]  ;;  %v1060_v37 = vld [vmem:[%s1424_s0 + $0x78] sm:$0xff]  ;;  %v1291_v41 = vld [vmem:[%s1427_s3] ss:$0 sm:$0xff] }
  0x10   :  { %v1075_v35 = vld [vmem:[%s1424_s0 + $0xf0] sm:$0xff]  ;;  %v1068_v38 = vld [vmem:[%s1424_s0 + $0xb8] sm:$0xff] }
  0x11   :  { %v1076_v39 = vld [vmem:[%s1424_s0 + $0xf8] sm:$0xff]  ;;  %s1118_s0 = smov [#allocation2]  }
  0x12   :  { %s863_s2 = sshll.u32 %s1118_s0, 4  ;;  %s864_s2 = int_to_ptr.vmem [resolvable:$true] %s863_s2 }
  0x1d   :  { %1014 = vmatmul.msk.bf16.gmra.mxu0 %vm258_vm2, %v1046_v12  ;;  %1022 = vmatmul.msk.bf16.gmra.mxu1 %vm258_vm2, %v1054_v13 }
  0x1e   :  { %1030 = vmatmul.msk.bf16.gmra.mxu2 %vm258_vm2, %v1062_v14  ;;  %1038 = vmatmul.msk.bf16.gmra.mxu3 %vm258_vm2, %v1070_v15 }
  0x2d   :  { %1015 = vmatmul.msk.bf16.gmra.mxu0 %vm258_vm2, %v1047_v16  ;;  %1023 = vmatmul.msk.bf16.gmra.mxu1 %vm258_vm2, %v1055_v17 }
  0x2e   :  { %1031 = vmatmul.msk.bf16.gmra.mxu2 %vm258_vm2, %v1063_v18  ;;  %1039 = vmatmul.msk.bf16.gmra.mxu3 %vm258_vm2, %v1071_v19 }
  0x3d   :  { %1016 = vmatmul.msk.bf16.gmra.mxu0 %vm258_vm2, %v1048_v20  ;;  %1024 = vmatmul.msk.bf16.gmra.mxu1 %vm258_vm2, %v1056_v21 }
  0x3e   :  { %1032 = vmatmul.msk.bf16.gmra.mxu2 %vm258_vm2, %v1064_v22  ;;  %1040 = vmatmul.msk.bf16.gmra.mxu3 %vm258_vm2, %v1072_v23 }
  0x4d   :  { %1017 = vmatmul.msk.bf16.gmra.mxu0 %vm258_vm2, %v1049_v24  ;;  %1025 = vmatmul.msk.bf16.gmra.mxu1 %vm258_vm2, %v1057_v25 }
  0x4e   :  { %1033 = vmatmul.msk.bf16.gmra.mxu2 %vm258_vm2, %v1065_v26  ;;  %1041 = vmatmul.msk.bf16.gmra.mxu3 %vm258_vm2, %v1073_v27 }
  0x5d   :  { %1018 = vmatmul.msk.bf16.gmra.mxu0 %vm258_vm2, %v1050_v28  ;;  %1026 = vmatmul.msk.bf16.gmra.mxu1 %vm258_vm2, %v1058_v29 }
  0x5e   :  { %1034 = vmatmul.msk.bf16.gmra.mxu2 %vm258_vm2, %v1066_v30  ;;  %1042 = vmatmul.msk.bf16.gmra.mxu3 %vm258_vm2, %v1074_v31 }
  0x6d   :  { %1019 = vmatmul.msk.bf16.gmra.mxu0 %vm258_vm2, %v1051_v32  ;;  %1027 = vmatmul.msk.bf16.gmra.mxu1 %vm258_vm2, %v1059_v33 }
  0x6e   :  { %1035 = vmatmul.msk.bf16.gmra.mxu2 %vm258_vm2, %v1067_v34  ;;  %1043 = vmatmul.msk.bf16.gmra.mxu3 %vm258_vm2, %v1075_v35 }
  0x7d   :  { %1020 = vmatmul.msk.bf16.gmra.mxu0 %vm258_vm2, %v1052_v36  ;;  %1028 = vmatmul.msk.bf16.gmra.mxu1 %vm258_vm2, %v1060_v37 }
  0x7e   :  { %1036 = vmatmul.msk.bf16.gmra.mxu2 %vm258_vm2, %v1068_v38  ;;  %1044 = vmatmul.msk.bf16.gmra.mxu3 %vm258_vm2, %v1076_v39 }
  0x8a   :  { %v371_v42 = vpop.f32.mrf.mxu0  ;;  %v411_v43 = vpop.f32.mrf.mxu1 }
  0x8b   :  { %v535_v44 = vmul.f32 %v1286_v40, %v371_v42  ;;  %v551_v45 = vmul.f32 %v1286_v40, %v411_v43 }
  0x8d   :  { %v603_v46 = vadd.f32 %v1291_v41, %v535_v44  ;;  %v619_v47 = vadd.f32 %v1291_v41, %v551_v45 }
  0x8f   :  { %v667_v48 = vmax.f32 %v603_v46, 0.0  ;;  %v683_v49 = vmax.f32 %v619_v47, 0.0 }
  0x91   :  { %v731_v50 = vmin.f32 %v667_v48, 6.0  ;;  %v747_v51 = vmin.f32 %v683_v49, 6.0  ;;  %v451_v52 = vpop.f32.mrf.mxu2  ;;  %v491_v53 = vpop.f32.mrf.mxu3 }
  0x92   :  { %v567_v54 = vmul.f32 %v1286_v40, %v451_v52  ;;  %v583_v55 = vmul.f32 %v1286_v40, %v491_v53  ;;  %v373_v56 = vpop.f32.mrf.mxu0  ;;  %v413_v57 = vpop.f32.mrf.mxu1 }
  0x93   :  { %795 = vst [vmem:[#allocation2] sm:$0xff] %v731_v50  ;;  %v536_v58 = vmul.f32 %v1286_v40, %v373_v56  ;;  %v552_v59 = vmul.f32 %v1286_v40, %v413_v57 }
  0x94   :  { %811 = vst [vmem:[#allocation2 + $0x80] sm:$0xff] %v747_v51  ;;  %v635_v60 = vadd.f32 %v1291_v41, %v567_v54  ;;  %v651_v61 = vadd.f32 %v1291_v41, %v583_v55 }
  0x95   :  { %v604_v62 = vadd.f32 %v1291_v41, %v536_v58  ;;  %v620_v63 = vadd.f32 %v1291_v41, %v552_v59 }
  0x96   :  { %v699_v0 = vmax.f32 %v635_v60, 0.0  ;;  %v715_v1 = vmax.f32 %v651_v61, 0.0 }
  0x97   :  { %v668_v2 = vmax.f32 %v604_v62, 0.0  ;;  %v684_v3 = vmax.f32 %v620_v63, 0.0 }
  0x98   :  { %v763_v4 = vmin.f32 %v699_v0, 6.0  ;;  %v779_v5 = vmin.f32 %v715_v1, 6.0 }
  0x99   :  { %v732_v6 = vmin.f32 %v668_v2, 6.0  ;;  %v748_v7 = vmin.f32 %v684_v3, 6.0  ;;  %v453_v8 = vpop.f32.mrf.mxu2  ;;  %v493_v9 = vpop.f32.mrf.mxu3 }
  0x9a   :  { %827 = vst [vmem:[#allocation2 + $0x100] sm:$0xff] %v763_v4  ;;  %v568_v10 = vmul.f32 %v1286_v40, %v453_v8  ;;  %v584_v11 = vmul.f32 %v1286_v40, %v493_v9  ;;  %v376_v12 = vpop.f32.mrf.mxu0  ;;  %v416_v13 = vpop.f32.mrf.mxu1 }
  0x9b   :  { %843 = vst [vmem:[#allocation2 + $0x180] sm:$0xff] %v779_v5  ;;  %v537_v14 = vmul.f32 %v1286_v40, %v376_v12  ;;  %v553_v15 = vmul.f32 %v1286_v40, %v416_v13 }
  0x9c   :  { %796 = vst [vmem:[#allocation2 + $0x8] sm:$0xff] %v732_v6  ;;  %v636_v16 = vadd.f32 %v1291_v41, %v568_v10  ;;  %v652_v17 = vadd.f32 %v1291_v41, %v584_v11 }
  0x9d   :  { %812 = vst [vmem:[#allocation2 + $0x88] sm:$0xff] %v748_v7  ;;  %v605_v18 = vadd.f32 %v1291_v41, %v537_v14  ;;  %v621_v19 = vadd.f32 %v1291_v41, %v553_v15 }
  0x9e   :  { %v700_v20 = vmax.f32 %v636_v16, 0.0  ;;  %v716_v21 = vmax.f32 %v652_v17, 0.0 }
  0x9f   :  { %v669_v22 = vmax.f32 %v605_v18, 0.0  ;;  %v685_v23 = vmax.f32 %v621_v19, 0.0 }
  0xa0   :  { %v764_v24 = vmin.f32 %v700_v20, 6.0  ;;  %v780_v25 = vmin.f32 %v716_v21, 6.0 }
  0xa1   :  { %v733_v26 = vmin.f32 %v669_v22, 6.0  ;;  %v749_v27 = vmin.f32 %v685_v23, 6.0  ;;  %v456_v28 = vpop.f32.mrf.mxu2  ;;  %v496_v29 = vpop.f32.mrf.mxu3 }
  0xa2   :  { %828 = vst [vmem:[#allocation2 + $0x108] sm:$0xff] %v764_v24  ;;  %v569_v30 = vmul.f32 %v1286_v40, %v456_v28  ;;  %v585_v31 = vmul.f32 %v1286_v40, %v496_v29  ;;  %v378_v32 = vpop.f32.mrf.mxu0  ;;  %v418_v33 = vpop.f32.mrf.mxu1 }
  0xa3   :  { %844 = vst [vmem:[#allocation2 + $0x188] sm:$0xff] %v780_v25  ;;  %v538_v34 = vmul.f32 %v1286_v40, %v378_v32  ;;  %v554_v35 = vmul.f32 %v1286_v40, %v418_v33 }
  0xa4   :  { %797 = vst [vmem:[#allocation2 + $0x10] sm:$0xff] %v733_v26  ;;  %v637_v36 = vadd.f32 %v1291_v41, %v569_v30  ;;  %v653_v37 = vadd.f32 %v1291_v41, %v585_v31 }
  0xa5   :  { %813 = vst [vmem:[#allocation2 + $0x90] sm:$0xff] %v749_v27  ;;  %v606_v38 = vadd.f32 %v1291_v41, %v538_v34  ;;  %v622_v39 = vadd.f32 %v1291_v41, %v554_v35 }
  0xa6   :  { %v701_v42 = vmax.f32 %v637_v36, 0.0  ;;  %v717_v43 = vmax.f32 %v653_v37, 0.0 }
  0xa7   :  { %v670_v44 = vmax.f32 %v606_v38, 0.0  ;;  %v686_v45 = vmax.f32 %v622_v39, 0.0 }
  0xa8   :  { %v765_v46 = vmin.f32 %v701_v42, 6.0  ;;  %v781_v47 = vmin.f32 %v717_v43, 6.0 }
  0xa9   :  { %v734_v48 = vmin.f32 %v670_v44, 6.0  ;;  %v750_v49 = vmin.f32 %v686_v45, 6.0  ;;  %v458_v50 = vpop.f32.mrf.mxu2  ;;  %v498_v51 = vpop.f32.mrf.mxu3 }
  0xaa   :  { %829 = vst [vmem:[#allocation2 + $0x110] sm:$0xff] %v765_v46  ;;  %v570_v52 = vmul.f32 %v1286_v40, %v458_v50  ;;  %v586_v53 = vmul.f32 %v1286_v40, %v498_v51  ;;  %v381_v54 = vpop.f32.mrf.mxu0  ;;  %v421_v55 = vpop.f32.mrf.mxu1 }
  0xab   :  { %845 = vst [vmem:[#allocation2 + $0x190] sm:$0xff] %v781_v47  ;;  %v539_v56 = vmul.f32 %v1286_v40, %v381_v54  ;;  %v555_v57 = vmul.f32 %v1286_v40, %v421_v55 }
  0xac   :  { %798 = vst [vmem:[#allocation2 + $0x18] sm:$0xff] %v734_v48  ;;  %v638_v58 = vadd.f32 %v1291_v41, %v570_v52  ;;  %v654_v59 = vadd.f32 %v1291_v41, %v586_v53 }
  0xad   :  { %814 = vst [vmem:[#allocation2 + $0x98] sm:$0xff] %v750_v49  ;;  %v607_v60 = vadd.f32 %v1291_v41, %v539_v56  ;;  %v623_v61 = vadd.f32 %v1291_v41, %v555_v57 }
  0xae   :  { %v702_v62 = vmax.f32 %v638_v58, 0.0  ;;  %v718_v63 = vmax.f32 %v654_v59, 0.0 }
  0xaf   :  { %v671_v0 = vmax.f32 %v607_v60, 0.0  ;;  %v687_v1 = vmax.f32 %v623_v61, 0.0 }
  0xb0   :  { %v766_v2 = vmin.f32 %v702_v62, 6.0  ;;  %v782_v3 = vmin.f32 %v718_v63, 6.0 }
  0xb1   :  { %v735_v4 = vmin.f32 %v671_v0, 6.0  ;;  %v751_v5 = vmin.f32 %v687_v1, 6.0  ;;  %v461_v6 = vpop.f32.mrf.mxu2  ;;  %v501_v7 = vpop.f32.mrf.mxu3 }
  0xb2   :  { %830 = vst [vmem:[#allocation2 + $0x118] sm:$0xff] %v766_v2  ;;  %v571_v8 = vmul.f32 %v1286_v40, %v461_v6  ;;  %v587_v9 = vmul.f32 %v1286_v40, %v501_v7  ;;  %v383_v10 = vpop.f32.mrf.mxu0  ;;  %v423_v11 = vpop.f32.mrf.mxu1 }
  0xb3   :  { %846 = vst [vmem:[#allocation2 + $0x198] sm:$0xff] %v782_v3  ;;  %v540_v12 = vmul.f32 %v1286_v40, %v383_v10  ;;  %v556_v13 = vmul.f32 %v1286_v40, %v423_v11 }
  0xb4   :  { %799 = vst [vmem:[#allocation2 + $0x20] sm:$0xff] %v735_v4  ;;  %v639_v14 = vadd.f32 %v1291_v41, %v571_v8  ;;  %v655_v15 = vadd.f32 %v1291_v41, %v587_v9 }
  0xb5   :  { %815 = vst [vmem:[#allocation2 + $0xa0] sm:$0xff] %v751_v5  ;;  %v608_v16 = vadd.f32 %v1291_v41, %v540_v12  ;;  %v624_v17 = vadd.f32 %v1291_v41, %v556_v13 }
  0xb6   :  { %v703_v18 = vmax.f32 %v639_v14, 0.0  ;;  %v719_v19 = vmax.f32 %v655_v15, 0.0 }
  0xb7   :  { %v672_v20 = vmax.f32 %v608_v16, 0.0  ;;  %v688_v21 = vmax.f32 %v624_v17, 0.0 }
  0xb8   :  { %v767_v22 = vmin.f32 %v703_v18, 6.0  ;;  %v783_v23 = vmin.f32 %v719_v19, 6.0 }
  0xb9   :  { %v736_v24 = vmin.f32 %v672_v20, 6.0  ;;  %v752_v25 = vmin.f32 %v688_v21, 6.0  ;;  %v463_v26 = vpop.f32.mrf.mxu2  ;;  %v503_v27 = vpop.f32.mrf.mxu3 }
  0xba   :  { %831 = vst [vmem:[#allocation2 + $0x120] sm:$0xff] %v767_v22  ;;  %v572_v28 = vmul.f32 %v1286_v40, %v463_v26  ;;  %v588_v29 = vmul.f32 %v1286_v40, %v503_v27  ;;  %v386_v30 = vpop.f32.mrf.mxu0  ;;  %v426_v31 = vpop.f32.mrf.mxu1 }
  0xbb   :  { %847 = vst [vmem:[#allocation2 + $0x1a0] sm:$0xff] %v783_v23  ;;  %v541_v32 = vmul.f32 %v1286_v40, %v386_v30  ;;  %v557_v33 = vmul.f32 %v1286_v40, %v426_v31 }
  0xbc   :  { %800 = vst [vmem:[#allocation2 + $0x28] sm:$0xff] %v736_v24  ;;  %v640_v34 = vadd.f32 %v1291_v41, %v572_v28  ;;  %v656_v35 = vadd.f32 %v1291_v41, %v588_v29 }
  0xbd   :  { %816 = vst [vmem:[#allocation2 + $0xa8] sm:$0xff] %v752_v25  ;;  %v609_v36 = vadd.f32 %v1291_v41, %v541_v32  ;;  %v625_v37 = vadd.f32 %v1291_v41, %v557_v33 }
  0xbe   :  { %v704_v38 = vmax.f32 %v640_v34, 0.0  ;;  %v720_v39 = vmax.f32 %v656_v35, 0.0 }
  0xbf   :  { %v673_v42 = vmax.f32 %v609_v36, 0.0  ;;  %v689_v43 = vmax.f32 %v625_v37, 0.0 }
  0xc0   :  { %v768_v44 = vmin.f32 %v704_v38, 6.0  ;;  %v784_v45 = vmin.f32 %v720_v39, 6.0 }
  0xc1   :  { %v737_v46 = vmin.f32 %v673_v42, 6.0  ;;  %v753_v47 = vmin.f32 %v689_v43, 6.0  ;;  %v466_v48 = vpop.f32.mrf.mxu2  ;;  %v506_v49 = vpop.f32.mrf.mxu3 }
  0xc2   :  { %832 = vst [vmem:[#allocation2 + $0x128] sm:$0xff] %v768_v44  ;;  %v573_v50 = vmul.f32 %v1286_v40, %v466_v48  ;;  %v589_v51 = vmul.f32 %v1286_v40, %v506_v49  ;;  %v388_v52 = vpop.f32.mrf.mxu0  ;;  %v428_v53 = vpop.f32.mrf.mxu1 }
  0xc3   :  { %848 = vst [vmem:[#allocation2 + $0x1a8] sm:$0xff] %v784_v45  ;;  %v542_v54 = vmul.f32 %v1286_v40, %v388_v52  ;;  %v558_v55 = vmul.f32 %v1286_v40, %v428_v53 }
  0xc4   :  { %801 = vst [vmem:[#allocation2 + $0x30] sm:$0xff] %v737_v46  ;;  %v641_v56 = vadd.f32 %v1291_v41, %v573_v50  ;;  %v657_v57 = vadd.f32 %v1291_v41, %v589_v51 }
  0xc5   :  { %817 = vst [vmem:[#allocation2 + $0xb0] sm:$0xff] %v753_v47  ;;  %v610_v58 = vadd.f32 %v1291_v41, %v542_v54  ;;  %v626_v59 = vadd.f32 %v1291_v41, %v558_v55 }
  0xc6   :  { %v705_v60 = vmax.f32 %v641_v56, 0.0  ;;  %v721_v61 = vmax.f32 %v657_v57, 0.0 }
  0xc7   :  { %v674_v62 = vmax.f32 %v610_v58, 0.0  ;;  %v690_v63 = vmax.f32 %v626_v59, 0.0 }
  0xc8   :  { %v769_v0 = vmin.f32 %v705_v60, 6.0  ;;  %v785_v1 = vmin.f32 %v721_v61, 6.0 }
  0xc9   :  { %v738_v2 = vmin.f32 %v674_v62, 6.0  ;;  %v754_v3 = vmin.f32 %v690_v63, 6.0  ;;  %v468_v4 = vpop.f32.mrf.mxu2  ;;  %v508_v5 = vpop.f32.mrf.mxu3 }
  0xca   :  { %833 = vst [vmem:[#allocation2 + $0x130] sm:$0xff] %v769_v0  ;;  %v574_v6 = vmul.f32 %v1286_v40, %v468_v4  ;;  %v590_v7 = vmul.f32 %v1286_v40, %v508_v5  ;;  %v391_v8 = vpop.f32.mrf.mxu0  ;;  %v431_v9 = vpop.f32.mrf.mxu1 }
  0xcb   :  { %849 = vst [vmem:[#allocation2 + $0x1b0] sm:$0xff] %v785_v1  ;;  %v543_v10 = vmul.f32 %v1286_v40, %v391_v8  ;;  %v559_v11 = vmul.f32 %v1286_v40, %v431_v9 }
  0xcc   :  { %802 = vst [vmem:[#allocation2 + $0x38] sm:$0xff] %v738_v2  ;;  %v642_v12 = vadd.f32 %v1291_v41, %v574_v6  ;;  %v658_v13 = vadd.f32 %v1291_v41, %v590_v7 }
  0xcd   :  { %818 = vst [vmem:[#allocation2 + $0xb8] sm:$0xff] %v754_v3  ;;  %v611_v14 = vadd.f32 %v1291_v41, %v543_v10  ;;  %v627_v15 = vadd.f32 %v1291_v41, %v559_v11 }
  0xce   :  { %v706_v16 = vmax.f32 %v642_v12, 0.0  ;;  %v722_v17 = vmax.f32 %v658_v13, 0.0 }
  0xcf   :  { %v675_v18 = vmax.f32 %v611_v14, 0.0  ;;  %v691_v19 = vmax.f32 %v627_v15, 0.0 }
  0xd0   :  { %v770_v20 = vmin.f32 %v706_v16, 6.0  ;;  %v786_v21 = vmin.f32 %v722_v17, 6.0 }
  0xd1   :  { %v739_v22 = vmin.f32 %v675_v18, 6.0  ;;  %v755_v23 = vmin.f32 %v691_v19, 6.0  ;;  %v471_v24 = vpop.f32.mrf.mxu2  ;;  %v511_v25 = vpop.f32.mrf.mxu3 }
  0xd2   :  { %834 = vst [vmem:[#allocation2 + $0x138] sm:$0xff] %v770_v20  ;;  %v575_v26 = vmul.f32 %v1286_v40, %v471_v24  ;;  %v591_v27 = vmul.f32 %v1286_v40, %v511_v25  ;;  %v393_v28 = vpop.f32.mrf.mxu0  ;;  %v433_v29 = vpop.f32.mrf.mxu1 }
  0xd3   :  { %850 = vst [vmem:[#allocation2 + $0x1b8] sm:$0xff] %v786_v21  ;;  %v544_v30 = vmul.f32 %v1286_v40, %v393_v28  ;;  %v560_v31 = vmul.f32 %v1286_v40, %v433_v29 }
  0xd4   :  { %803 = vst [vmem:[#allocation2 + $0x40] sm:$0xff] %v739_v22  ;;  %v643_v32 = vadd.f32 %v1291_v41, %v575_v26  ;;  %v659_v33 = vadd.f32 %v1291_v41, %v591_v27 }
  0xd5   :  { %819 = vst [vmem:[#allocation2 + $0xc0] sm:$0xff] %v755_v23  ;;  %v612_v34 = vadd.f32 %v1291_v41, %v544_v30  ;;  %v628_v35 = vadd.f32 %v1291_v41, %v560_v31 }
  0xd6   :  { %v707_v36 = vmax.f32 %v643_v32, 0.0  ;;  %v723_v37 = vmax.f32 %v659_v33, 0.0 }
  0xd7   :  { %v676_v38 = vmax.f32 %v612_v34, 0.0  ;;  %v692_v39 = vmax.f32 %v628_v35, 0.0 }
  0xd8   :  { %v771_v42 = vmin.f32 %v707_v36, 6.0  ;;  %v787_v43 = vmin.f32 %v723_v37, 6.0 }
  0xd9   :  { %v740_v44 = vmin.f32 %v676_v38, 6.0  ;;  %v756_v45 = vmin.f32 %v692_v39, 6.0  ;;  %v473_v46 = vpop.f32.mrf.mxu2  ;;  %v513_v47 = vpop.f32.mrf.mxu3 }
  0xda   :  { %835 = vst [vmem:[#allocation2 + $0x140] sm:$0xff] %v771_v42  ;;  %v576_v48 = vmul.f32 %v1286_v40, %v473_v46  ;;  %v592_v49 = vmul.f32 %v1286_v40, %v513_v47  ;;  %v396_v50 = vpop.f32.mrf.mxu0  ;;  %v436_v51 = vpop.f32.mrf.mxu1 }
  0xdb   :  { %851 = vst [vmem:[#allocation2 + $0x1c0] sm:$0xff] %v787_v43  ;;  %v545_v52 = vmul.f32 %v1286_v40, %v396_v50  ;;  %v561_v53 = vmul.f32 %v1286_v40, %v436_v51 }
  0xdc   :  { %804 = vst [vmem:[#allocation2 + $0x48] sm:$0xff] %v740_v44  ;;  %v644_v54 = vadd.f32 %v1291_v41, %v576_v48  ;;  %v660_v55 = vadd.f32 %v1291_v41, %v592_v49 }
  0xdd   :  { %820 = vst [vmem:[#allocation2 + $0xc8] sm:$0xff] %v756_v45  ;;  %v613_v56 = vadd.f32 %v1291_v41, %v545_v52  ;;  %v629_v57 = vadd.f32 %v1291_v41, %v561_v53 }
  0xde   :  { %v708_v58 = vmax.f32 %v644_v54, 0.0  ;;  %v724_v59 = vmax.f32 %v660_v55, 0.0 }
  0xdf   :  { %v677_v60 = vmax.f32 %v613_v56, 0.0  ;;  %v693_v61 = vmax.f32 %v629_v57, 0.0 }
  0xe0   :  { %v772_v62 = vmin.f32 %v708_v58, 6.0  ;;  %v788_v63 = vmin.f32 %v724_v59, 6.0 }
  0xe1   :  { %v741_v0 = vmin.f32 %v677_v60, 6.0  ;;  %v757_v1 = vmin.f32 %v693_v61, 6.0  ;;  %v476_v2 = vpop.f32.mrf.mxu2  ;;  %v516_v3 = vpop.f32.mrf.mxu3 }
  0xe2   :  { %836 = vst [vmem:[#allocation2 + $0x148] sm:$0xff] %v772_v62  ;;  %v577_v4 = vmul.f32 %v1286_v40, %v476_v2  ;;  %v593_v5 = vmul.f32 %v1286_v40, %v516_v3  ;;  %v398_v6 = vpop.f32.mrf.mxu0  ;;  %v438_v7 = vpop.f32.mrf.mxu1 }
  0xe3   :  { %852 = vst [vmem:[#allocation2 + $0x1c8] sm:$0xff] %v788_v63  ;;  %v546_v8 = vmul.f32 %v1286_v40, %v398_v6  ;;  %v562_v9 = vmul.f32 %v1286_v40, %v438_v7 }
  0xe4   :  { %805 = vst [vmem:[#allocation2 + $0x50] sm:$0xff] %v741_v0  ;;  %v645_v10 = vadd.f32 %v1291_v41, %v577_v4  ;;  %v661_v11 = vadd.f32 %v1291_v41, %v593_v5 }
  0xe5   :  { %821 = vst [vmem:[#allocation2 + $0xd0] sm:$0xff] %v757_v1  ;;  %v614_v12 = vadd.f32 %v1291_v41, %v546_v8  ;;  %v630_v13 = vadd.f32 %v1291_v41, %v562_v9 }
  0xe6   :  { %v709_v14 = vmax.f32 %v645_v10, 0.0  ;;  %v725_v15 = vmax.f32 %v661_v11, 0.0 }
  0xe7   :  { %v678_v16 = vmax.f32 %v614_v12, 0.0  ;;  %v694_v17 = vmax.f32 %v630_v13, 0.0 }
  0xe8   :  { %v773_v18 = vmin.f32 %v709_v14, 6.0  ;;  %v789_v19 = vmin.f32 %v725_v15, 6.0 }
  0xe9   :  { %v742_v20 = vmin.f32 %v678_v16, 6.0  ;;  %v758_v21 = vmin.f32 %v694_v17, 6.0  ;;  %v478_v22 = vpop.f32.mrf.mxu2  ;;  %v518_v23 = vpop.f32.mrf.mxu3 }
  0xea   :  { %837 = vst [vmem:[#allocation2 + $0x150] sm:$0xff] %v773_v18  ;;  %v578_v24 = vmul.f32 %v1286_v40, %v478_v22  ;;  %v594_v25 = vmul.f32 %v1286_v40, %v518_v23  ;;  %v401_v26 = vpop.f32.mrf.mxu0  ;;  %v441_v27 = vpop.f32.mrf.mxu1 }
  0xeb   :  { %853 = vst [vmem:[#allocation2 + $0x1d0] sm:$0xff] %v789_v19  ;;  %v547_v28 = vmul.f32 %v1286_v40, %v401_v26  ;;  %v563_v29 = vmul.f32 %v1286_v40, %v441_v27 }
  0xec   :  { %806 = vst [vmem:[#allocation2 + $0x58] sm:$0xff] %v742_v20  ;;  %v646_v30 = vadd.f32 %v1291_v41, %v578_v24  ;;  %v662_v31 = vadd.f32 %v1291_v41, %v594_v25 }
  0xed   :  { %822 = vst [vmem:[#allocation2 + $0xd8] sm:$0xff] %v758_v21  ;;  %v615_v32 = vadd.f32 %v1291_v41, %v547_v28  ;;  %v631_v33 = vadd.f32 %v1291_v41, %v563_v29 }
  0xee   :  { %v710_v34 = vmax.f32 %v646_v30, 0.0  ;;  %v726_v35 = vmax.f32 %v662_v31, 0.0 }
  0xef   :  { %v679_v36 = vmax.f32 %v615_v32, 0.0  ;;  %v695_v37 = vmax.f32 %v631_v33, 0.0 }
  0xf0   :  { %v774_v38 = vmin.f32 %v710_v34, 6.0  ;;  %v790_v39 = vmin.f32 %v726_v35, 6.0 }
  0xf1   :  { %v743_v42 = vmin.f32 %v679_v36, 6.0  ;;  %v759_v43 = vmin.f32 %v695_v37, 6.0  ;;  %v481_v44 = vpop.f32.mrf.mxu2  ;;  %v521_v45 = vpop.f32.mrf.mxu3 }
  0xf2   :  { %838 = vst [vmem:[#allocation2 + $0x158] sm:$0xff] %v774_v38  ;;  %v579_v46 = vmul.f32 %v1286_v40, %v481_v44  ;;  %v595_v47 = vmul.f32 %v1286_v40, %v521_v45  ;;  %v403_v48 = vpop.f32.mrf.mxu0  ;;  %v443_v49 = vpop.f32.mrf.mxu1 }
  0xf3   :  { %854 = vst [vmem:[#allocation2 + $0x1d8] sm:$0xff] %v790_v39  ;;  %v548_v50 = vmul.f32 %v1286_v40, %v403_v48  ;;  %v564_v51 = vmul.f32 %v1286_v40, %v443_v49 }
  0xf4   :  { %807 = vst [vmem:[#allocation2 + $0x60] sm:$0xff] %v743_v42  ;;  %v647_v52 = vadd.f32 %v1291_v41, %v579_v46  ;;  %v663_v53 = vadd.f32 %v1291_v41, %v595_v47 }
  0xf5   :  { %823 = vst [vmem:[#allocation2 + $0xe0] sm:$0xff] %v759_v43  ;;  %v616_v54 = vadd.f32 %v1291_v41, %v548_v50  ;;  %v632_v55 = vadd.f32 %v1291_v41, %v564_v51 }
  0xf6   :  { %v711_v56 = vmax.f32 %v647_v52, 0.0  ;;  %v727_v57 = vmax.f32 %v663_v53, 0.0 }
  0xf7   :  { %v680_v58 = vmax.f32 %v616_v54, 0.0  ;;  %v696_v59 = vmax.f32 %v632_v55, 0.0 }
  0xf8   :  { %v775_v60 = vmin.f32 %v711_v56, 6.0  ;;  %v791_v61 = vmin.f32 %v727_v57, 6.0 }
  0xf9   :  { %v744_v62 = vmin.f32 %v680_v58, 6.0  ;;  %v760_v63 = vmin.f32 %v696_v59, 6.0  ;;  %v483_v0 = vpop.f32.mrf.mxu2  ;;  %v523_v1 = vpop.f32.mrf.mxu3 }
  0xfa   :  { %839 = vst [vmem:[#allocation2 + $0x160] sm:$0xff] %v775_v60  ;;  %v580_v2 = vmul.f32 %v1286_v40, %v483_v0  ;;  %v596_v3 = vmul.f32 %v1286_v40, %v523_v1  ;;  %v406_v4 = vpop.f32.mrf.mxu0  ;;  %v446_v5 = vpop.f32.mrf.mxu1 }
  0xfb   :  { %855 = vst [vmem:[#allocation2 + $0x1e0] sm:$0xff] %v791_v61  ;;  %v549_v6 = vmul.f32 %v1286_v40, %v406_v4  ;;  %v565_v7 = vmul.f32 %v1286_v40, %v446_v5 }
  0xfc   :  { %808 = vst [vmem:[#allocation2 + $0x68] sm:$0xff] %v744_v62  ;;  %v648_v8 = vadd.f32 %v1291_v41, %v580_v2  ;;  %v664_v9 = vadd.f32 %v1291_v41, %v596_v3 }
  0xfd   :  { %824 = vst [vmem:[#allocation2 + $0xe8] sm:$0xff] %v760_v63  ;;  %v617_v10 = vadd.f32 %v1291_v41, %v549_v6  ;;  %v633_v11 = vadd.f32 %v1291_v41, %v565_v7 }
  0xfe   :  { %v712_v12 = vmax.f32 %v648_v8, 0.0  ;;  %v728_v13 = vmax.f32 %v664_v9, 0.0 }
  0xff   :  { %v681_v14 = vmax.f32 %v617_v10, 0.0  ;;  %v697_v15 = vmax.f32 %v633_v11, 0.0 }
 0x100   :  { %v776_v16 = vmin.f32 %v712_v12, 6.0  ;;  %v792_v17 = vmin.f32 %v728_v13, 6.0 }
 0x101   :  { %v745_v18 = vmin.f32 %v681_v14, 6.0  ;;  %v761_v19 = vmin.f32 %v697_v15, 6.0  ;;  %v486_v20 = vpop.f32.mrf.mxu2  ;;  %v526_v21 = vpop.f32.mrf.mxu3 }
 0x102   :  { %840 = vst [vmem:[#allocation2 + $0x168] sm:$0xff] %v776_v16  ;;  %v581_v22 = vmul.f32 %v1286_v40, %v486_v20  ;;  %v597_v23 = vmul.f32 %v1286_v40, %v526_v21  ;;  %v408_v24 = vpop.f32.mrf.mxu0  ;;  %v448_v25 = vpop.f32.mrf.mxu1 }
 0x103   :  { %856 = vst [vmem:[#allocation2 + $0x1e8] sm:$0xff] %v792_v17  ;;  %v550_v26 = vmul.f32 %v1286_v40, %v408_v24  ;;  %v566_v27 = vmul.f32 %v1286_v40, %v448_v25 }
 0x104   :  { %809 = vst [vmem:[#allocation2 + $0x70] sm:$0xff] %v745_v18  ;;  %v649_v28 = vadd.f32 %v1291_v41, %v581_v22  ;;  %v665_v29 = vadd.f32 %v1291_v41, %v597_v23 }
 0x105   :  { %825 = vst [vmem:[#allocation2 + $0xf0] sm:$0xff] %v761_v19  ;;  %v618_v30 = vadd.f32 %v1291_v41, %v550_v26  ;;  %v634_v31 = vadd.f32 %v1291_v41, %v566_v27 }
 0x106   :  { %v713_v32 = vmax.f32 %v649_v28, 0.0  ;;  %v729_v33 = vmax.f32 %v665_v29, 0.0 }
 0x107   :  { %v682_v34 = vmax.f32 %v618_v30, 0.0  ;;  %v698_v35 = vmax.f32 %v634_v31, 0.0 }
 0x108   :  { %v777_v36 = vmin.f32 %v713_v32, 6.0  ;;  %v793_v37 = vmin.f32 %v729_v33, 6.0 }
 0x109   :  { %v746_v38 = vmin.f32 %v682_v34, 6.0  ;;  %v762_v39 = vmin.f32 %v698_v35, 6.0  ;;  %v488_v42 = vpop.f32.mrf.mxu2  ;;  %v528_v43 = vpop.f32.mrf.mxu3 }
 0x10a   :  { %841 = vst [vmem:[#allocation2 + $0x170] sm:$0xff] %v777_v36  ;;  %v582_v44 = vmul.f32 %v1286_v40, %v488_v42  ;;  %v598_v45 = vmul.f32 %v1286_v40, %v528_v43 }
 0x10b   :  { %857 = vst [vmem:[#allocation2 + $0x1f0] sm:$0xff] %v793_v37 }
 0x10c   :  { %810 = vst [vmem:[#allocation2 + $0x78] sm:$0xff] %v746_v38  ;;  %v650_v46 = vadd.f32 %v1291_v41, %v582_v44  ;;  %v666_v47 = vadd.f32 %v1291_v41, %v598_v45 }
 0x10d   :  { %826 = vst [vmem:[#allocation2 + $0xf8] sm:$0xff] %v762_v39 }
 0x10e   :  { %v714_v48 = vmax.f32 %v650_v46, 0.0  ;;  %v730_v49 = vmax.f32 %v666_v47, 0.0 }
 0x110   :  { %v778_v50 = vmin.f32 %v714_v48, 6.0  ;;  %v794_v51 = vmin.f32 %v730_v49, 6.0 }
 0x112   :  { %842 = vst [vmem:[#allocation2 + $0x178] sm:$0xff] %v778_v50 }
 0x113   :  { %858 = vst [vmem:[#allocation2 + $0x1f8] sm:$0xff] %v794_v51 }
 0x114   :  { %871 = dma.vmem_to_hbm [thread:$0]  %s864_s2, 8192, %s866_s9, [#allocation3], %s1119_s10, %s1119_s10, %s1120_s11  }
 0x115   :  { %1115 = dma.done.wait [#allocation3], 8192  }
 0x116   :  { %1116 = vsyncadd [#allocation3], 4294959104 }
 0x117   :  { %876 = vsyncpa [#allocation3], 1 }

</bundles_post_ra>
